<compile_context>
chip_gen: v5e
topology: v5e:2x2
jax: 0.10.0
libtpu: 0.0.40
codegen_flags: <defaults>
</compile_context>

<pallas_src>
import jax
import jax.numpy as jnp
from jax.experimental import pallas as pl
from jax.experimental.pallas import tpu as pltpu


def _self_attn_kernel(x_ref, wq_ref, bq_ref, wvk_ref, bvk_ref, gamma_ref,
                      out_ref, att_ref=None):
    # x_ref:   (1, C, N)        full image for this batch (resident across q tiles)
    # wq_ref:  (C, Cq)          query weight, (in, out) orientation
    # bq_ref:  (1, Cq)
    # wvk_ref: (C + Cq, C)      fused [value; key] weights, (out, in) orientation
    # bvk_ref: (C + Cq, 1)
    # gamma_ref: (1,) in SMEM   residual scale (scalar path)
    # out_ref: (1, C, TQ)       output tile, spatial on lanes (lane-dense store)
    # att_ref: (1, TQ, N)       attention rows for this query tile
    C = x_ref.shape[1]
    tq = out_ref.shape[2]
    qi = pl.program_id(1)
    col0 = pl.multiple_of(qi * tq, tq)

    x_full = x_ref[0]                              # (C, N)  f32
    x_tile = x_ref[0, :, pl.ds(col0, tq)]          # (C, TQ) f32

    # Fused value|key 1x1 convolutions over all N pixels: one MXU matmul whose
    # output lane dim is N (instead of three matmuls with 4/4/32-wide outputs).
    vk = jnp.dot(wvk_ref[...].astype(jnp.bfloat16),
                 x_full.astype(jnp.bfloat16),
                 preferred_element_type=jnp.float32) + bvk_ref[...]      # (C+Cq, N)
    v_t = vk[:C, :]                                 # (C,  N)   value, channels on sublanes
    k_t = vk[C:, :]                                 # (Cq, N)   key

    # Query projection only for this tile's TQ pixels.
    q = jnp.dot(x_tile.T.astype(jnp.bfloat16),      # (TQ, C)
                wq_ref[...].astype(jnp.bfloat16),   # (C, Cq)
                preferred_element_type=jnp.float32) + bq_ref[...]        # (TQ, Cq)

    # energy[i, j] = q_i . k_j   (torch.bmm(proj_query, proj_key))
    energy = jnp.dot(q.astype(jnp.bfloat16), k_t.astype(jnp.bfloat16),
                     preferred_element_type=jnp.float32)                 # (TQ, N)

    # Row softmax over keys (last dim = lanes), kept entirely in f32.
    m = jnp.max(energy, axis=-1, keepdims=True)
    e = jnp.exp(energy - m)
    att = e * pl.reciprocal(jnp.sum(e, axis=-1, keepdims=True), approx=True)

    # out_t[c, i] = sum_j v_t[c, j] * att[i, j]
    #   == torch.bmm(proj_value, attention.permute(0, 2, 1)), already in (C, N) layout
    out_t = jax.lax.dot_general(
        v_t.astype(jnp.bfloat16), att.astype(jnp.bfloat16),
        dimension_numbers=(((1,), (1,)), ((), ())),
        preferred_element_type=jnp.float32)                              # (C, TQ)

    out_ref[0] = gamma_ref[0] * out_t + x_tile
    if att_ref is not None:
        att_ref[0] = att


def self_attention(x_nchw, wq, bq, wk, bk, wv, bv, gamma, *, return_attention=True):
    """SelfAttention forward.

    x_nchw: (B, C, W, H) float32.
    wq, wk: (C//8, C); wv: (C, C)   -- PyTorch Conv2d(1x1) weight layout (out, in).
    bq, bk: (C//8,);   bv: (C,)
    gamma:  (1,)
    Returns (out_nchw, attention) (or just out_nchw if return_attention=False).
    """
    B, C, W, H = x_nchw.shape
    N = W * H
    Cq = wq.shape[0]

    # NCHW -> (B, C, N) is a pure reshape (contiguous): no HBM transpose needed,
    # and the spatial axis N lands on the lane axis inside the kernel.
    x_flat = x_nchw.reshape(B, C, N)

    # Fuse the value and key projections into a single weight / bias operand.
    w_vk = jnp.concatenate([wv, wk], axis=0)                    # (C+Cq, C)
    b_vk = jnp.concatenate([bv, bk], axis=0).reshape(C + Cq, 1)  # (C+Cq, 1)
    wq_io = wq.T                                                 # (C, Cq)
    bq_row = bq.reshape(1, Cq)
    gamma1 = jnp.asarray(gamma, jnp.float32).reshape(1)

    # Query tile: 128 rows when N allows (lane-dense out stores, VMEM bounded to
    # O(TQ*N)); otherwise fall back to a single full tile for ragged N.
    TQ = 128 if (N % 128 == 0) else N
    grid = (B, N // TQ)

    const2d = lambda shape: pl.BlockSpec(shape, lambda b, q: (0, 0))
    in_specs = [
        pl.BlockSpec((1, C, N), lambda b, q: (b, 0, 0)),         # x (resident per batch)
        const2d((C, Cq)),                                        # wq
        const2d((1, Cq)),                                        # bq
        const2d((C + Cq, C)),                                    # fused [wv; wk]
        const2d((C + Cq, 1)),                                    # fused [bv; bk]
        pl.BlockSpec(memory_space=pltpu.MemorySpace.SMEM),       # gamma (scalar path)
    ]
    out_shapes = [jax.ShapeDtypeStruct((B, C, N), jnp.float32)]
    out_specs = [pl.BlockSpec((1, C, TQ), lambda b, q: (b, 0, q))]
    if return_attention:
        out_shapes.append(jax.ShapeDtypeStruct((B, N, N), jnp.float32))
        out_specs.append(pl.BlockSpec((1, TQ, N), lambda b, q: (b, q, 0)))

    results = pl.pallas_call(
        _self_attn_kernel,
        out_shape=tuple(out_shapes),
        grid_spec=pltpu.PrefetchScalarGridSpec(
            num_scalar_prefetch=0,
            grid=grid,
            in_specs=in_specs,
            out_specs=out_specs,
        ),
        compiler_params=pltpu.CompilerParams(
            dimension_semantics=("parallel", "parallel"),   # batch x query-tile (v7x: 2 TCs)
            vmem_limit_bytes=48 * 1024 * 1024,              # explicit, fits v7x's 64 MiB VMEM
        ),
    )(x_flat, wq_io, bq_row, w_vk, b_vk, gamma1)

    out_nchw = results[0].reshape(B, C, W, H)
    if return_attention:
        return out_nchw, results[1]
    return out_nchw


def _reference(x_nchw, wq, bq, wk, bk, wv, bv, gamma):
    """Pure-JAX f32 reference mirroring the PyTorch forward exactly."""
    B, C, W, H = x_nchw.shape
    N = W * H
    xf = x_nchw.reshape(B, C, N)                                   # (B, C, N)
    q = jnp.einsum("oc,bcn->bon", wq, xf) + bq[None, :, None]      # (B, Cq, N)
    k = jnp.einsum("oc,bcn->bon", wk, xf) + bk[None, :, None]
    v = jnp.einsum("oc,bcn->bon", wv, xf) + bv[None, :, None]      # (B, C, N)
    energy = jnp.einsum("bci,bcj->bij", q, k)                      # (B, N, N)
    att = jax.nn.softmax(energy, axis=-1)
    out = jnp.einsum("bcj,bij->bci", v, att)                       # (B, C, N)
    out = gamma.reshape(()) * out + xf
    return out.reshape(B, C, W, H), att


if __name__ == "__main__":
    B, C, W, H = 2, 32, 16, 16          # in_dim = 32 -> query/key channels = 4
    Cq = C // 8

    key = jax.random.PRNGKey(0)
    kx, kq, kk, kvw, kbq, kbk, kbv = jax.random.split(key, 7)

    x = jax.random.normal(kx, (B, C, W, H), dtype=jnp.float32)

    # Conv2d(kernel_size=1) weights in PyTorch layout (out_channels, in_channels).
    scale = 1.0 / jnp.sqrt(jnp.float32(C))
    wq = jax.random.normal(kq, (Cq, C), dtype=jnp.float32) * scale
    wk = jax.random.normal(kk, (Cq, C), dtype=jnp.float32) * scale
    wv = jax.random.normal(kvw, (C, C), dtype=jnp.float32) * scale
    bq = jax.random.normal(kbq, (Cq,), dtype=jnp.float32) * scale
    bk = jax.random.normal(kbk, (Cq,), dtype=jnp.float32) * scale
    bv = jax.random.normal(kbv, (C,), dtype=jnp.float32) * scale
    # PyTorch inits gamma to zeros; 0.5 here so the residual-scale path is exercised.
    gamma = jnp.array([0.5], dtype=jnp.float32)

    out, att = self_attention(x, wq, bq, wk, bk, wv, bv, gamma)
    jax.block_until_ready((out, att))

    ref_out, ref_att = _reference(x, wq, bq, wk, bk, wv, bv, gamma)
    assert out.shape == (B, C, W, H)
    assert att.shape == (B, W * H, W * H)
    # bf16 MXU operands (f32 accumulation) + approx reciprocal -> relaxed tolerances
    # vs. the pure-f32 reference.
    assert jnp.allclose(att, ref_att, atol=2e-2, rtol=2e-2), \
        float(jnp.max(jnp.abs(att - ref_att)))
    assert jnp.allclose(out, ref_out, atol=6e-2, rtol=6e-2), \
        float(jnp.max(jnp.abs(out - ref_out)))

    print("KERNEL_OK")
</pallas_src>

<mosaic_0001>
module attributes {stable_mosaic.version = 11 : i64} {
  func.func @_self_attn_kernel(%arg0: i32, %arg1: i32, %arg2: memref<1x32x256xf32, #tpu.memory_space<vmem>>, %arg3: memref<32x4xf32, #tpu.memory_space<vmem>>, %arg4: memref<1x4xf32, #tpu.memory_space<vmem>>, %arg5: memref<36x32xf32, #tpu.memory_space<vmem>>, %arg6: memref<36x1xf32, #tpu.memory_space<vmem>>, %arg7: memref<1xf32, #tpu.memory_space<smem>>, %arg8: memref<1x32x128xf32, #tpu.memory_space<vmem>>, %arg9: memref<1x128x256xf32, #tpu.memory_space<vmem>>) attributes {dimension_semantics = [#tpu.dimension_semantics<parallel>, #tpu.dimension_semantics<parallel>], iteration_bounds = array<i64: 2, 2>, scalar_prefetch = 0 : i64, scratch_operands = 0 : i64, tpu.core_type = #tpu.core_type<tc>, window_params = [{transform_indices = @transform_0, window_bounds = array<i64: 1, 32, 256>}, {pipeline_mode = #tpu.pipeline_mode<synchronous>, transform_indices = @transform_1, window_bounds = array<i64: 32, 4>}, {pipeline_mode = #tpu.pipeline_mode<synchronous>, transform_indices = @transform_2, window_bounds = array<i64: 1, 4>}, {pipeline_mode = #tpu.pipeline_mode<synchronous>, transform_indices = @transform_3, window_bounds = array<i64: 36, 32>}, {pipeline_mode = #tpu.pipeline_mode<synchronous>, transform_indices = @transform_4, window_bounds = array<i64: 36, 1>}, {transform_indices = @transform_5, window_bounds = array<i64: 1>}, {transform_indices = @transform_6, window_bounds = array<i64: 1, 32, 128>}, {transform_indices = @transform_7, window_bounds = array<i64: 1, 128, 256>}]} {
    %c128_i32 = arith.constant 128 : i32
    %0 = arith.muli %arg1, %c128_i32 : i32
    %1 = tpu.assume_multiple %0, 128 : i32
    %c0 = arith.constant 0 : index
    %c0_0 = arith.constant 0 : index
    %c0_1 = arith.constant 0 : index
    %2 = vector.load %arg2[%c0, %c0_0, %c0_1] : memref<1x32x256xf32, #tpu.memory_space<vmem>>, vector<1x32x256xf32>
    %3 = vector.shape_cast %2 : vector<1x32x256xf32> to vector<32x256xf32>
    %c0_2 = arith.constant 0 : index
    %c0_3 = arith.constant 0 : index
    %4 = arith.index_cast %1 : i32 to index
    %5 = vector.load %arg2[%c0_2, %c0_3, %4] : memref<1x32x256xf32, #tpu.memory_space<vmem>>, vector<1x32x128xf32>
    %6 = vector.shape_cast %5 : vector<1x32x128xf32> to vector<32x128xf32>
    %c0_4 = arith.constant 0 : index
    %c0_5 = arith.constant 0 : index
    %7 = vector.load %arg5[%c0_4, %c0_5] : memref<36x32xf32, #tpu.memory_space<vmem>>, vector<36x32xf32>
    %8 = arith.truncf %7 : vector<36x32xf32> to vector<36x32xbf16>
    %9 = arith.truncf %3 : vector<32x256xf32> to vector<32x256xbf16>
    %cst = arith.constant dense<0.000000e+00> : vector<36x256xf32>
    %10 = tpu.matmul %8, %9, %cst {dimension_numbers = #tpu.dot_dimension_numbers<[1], [0], [0], [1], [0, 0, 1, 1], [], []>} : vector<36x32xbf16>, vector<32x256xbf16>, vector<36x256xf32> -> vector<36x256xf32>
    %c0_6 = arith.constant 0 : index
    %c0_7 = arith.constant 0 : index
    %11 = vector.load %arg6[%c0_6, %c0_7] : memref<36x1xf32, #tpu.memory_space<vmem>>, vector<36x1xf32>
    %12 = vector.broadcast %11 : vector<36x1xf32> to vector<36x256xf32>
    %13 = arith.addf %10, %12 : vector<36x256xf32>
    %14 = vector.extract_strided_slice %13 {offsets = [0, 0], sizes = [32, 256], strides = [1, 1]} : vector<36x256xf32> to vector<32x256xf32>
    %15 = vector.extract_strided_slice %13 {offsets = [32, 0], sizes = [4, 256], strides = [1, 1]} : vector<36x256xf32> to vector<4x256xf32>
    %16 = tpu.transpose %6, [1, 0] : vector<32x128xf32> -> vector<128x32xf32>
    %17 = arith.truncf %16 : vector<128x32xf32> to vector<128x32xbf16>
    %c0_8 = arith.constant 0 : index
    %c0_9 = arith.constant 0 : index
    %18 = vector.load %arg3[%c0_8, %c0_9] : memref<32x4xf32, #tpu.memory_space<vmem>>, vector<32x4xf32>
    %19 = arith.truncf %18 : vector<32x4xf32> to vector<32x4xbf16>
    %cst_10 = arith.constant dense<0.000000e+00> : vector<128x4xf32>
    %20 = tpu.matmul %17, %19, %cst_10 {dimension_numbers = #tpu.dot_dimension_numbers<[1], [0], [0], [1], [0, 0, 1, 1], [], []>} : vector<128x32xbf16>, vector<32x4xbf16>, vector<128x4xf32> -> vector<128x4xf32>
    %c0_11 = arith.constant 0 : index
    %c0_12 = arith.constant 0 : index
    %21 = vector.load %arg4[%c0_11, %c0_12] : memref<1x4xf32, #tpu.memory_space<vmem>>, vector<1x4xf32>
    %22 = vector.broadcast %21 : vector<1x4xf32> to vector<128x4xf32>
    %23 = arith.addf %20, %22 : vector<128x4xf32>
    %24 = arith.truncf %23 : vector<128x4xf32> to vector<128x4xbf16>
    %25 = arith.truncf %15 : vector<4x256xf32> to vector<4x256xbf16>
    %cst_13 = arith.constant dense<0.000000e+00> : vector<128x256xf32>
    %26 = tpu.matmul %24, %25, %cst_13 {dimension_numbers = #tpu.dot_dimension_numbers<[1], [0], [0], [1], [0, 0, 1, 1], [], []>} : vector<128x4xbf16>, vector<4x256xbf16>, vector<128x256xf32> -> vector<128x256xf32>
    %cst_14 = arith.constant dense<0xFF800000> : vector<128xf32>
    %27 = vector.multi_reduction <maximumf>, %26, %cst_14 [1] : vector<128x256xf32> to vector<128xf32>
    %28 = vector.shape_cast %27 : vector<128xf32> to vector<128x1xf32>
    %29 = vector.broadcast %28 : vector<128x1xf32> to vector<128x256xf32>
    %30 = arith.subf %26, %29 : vector<128x256xf32>
    %31 = math.exp %30 : vector<128x256xf32>
    %cst_15 = arith.constant dense<0.000000e+00> : vector<128xf32>
    %32 = vector.multi_reduction <add>, %31, %cst_15 [1] : vector<128x256xf32> to vector<128xf32>
    %33 = vector.shape_cast %32 : vector<128xf32> to vector<128x1xf32>
    %34 = tpu.reciprocal %33 {approx = true} : vector<128x1xf32> -> vector<128x1xf32>
    %35 = vector.broadcast %34 : vector<128x1xf32> to vector<128x256xf32>
    %36 = arith.mulf %31, %35 : vector<128x256xf32>
    %37 = arith.truncf %14 : vector<32x256xf32> to vector<32x256xbf16>
    %38 = arith.truncf %36 : vector<128x256xf32> to vector<128x256xbf16>
    %cst_16 = arith.constant dense<0.000000e+00> : vector<32x128xf32>
    %39 = tpu.matmul %37, %38, %cst_16 {dimension_numbers = #tpu.dot_dimension_numbers<[1], [1], [0], [0], [0, 0, 1, 0], [], []>} : vector<32x256xbf16>, vector<128x256xbf16>, vector<32x128xf32> -> vector<32x128xf32>
    %c0_17 = arith.constant 0 : index
    %40 = memref.load %arg7[%c0_17] : memref<1xf32, #tpu.memory_space<smem>>
    %41 = vector.broadcast %40 : f32 to vector<32x128xf32>
    %42 = arith.mulf %41, %39 : vector<32x128xf32>
    %43 = arith.addf %42, %6 : vector<32x128xf32>
    %c0_18 = arith.constant 0 : index
    %c0_19 = arith.constant 0 : index
    %c0_20 = arith.constant 0 : index
    %44 = vector.load %arg8[%c0_18, %c0_19, %c0_20] : memref<1x32x128xf32, #tpu.memory_space<vmem>>, vector<1x32x128xf32>
    %45 = vector.shape_cast %44 : vector<1x32x128xf32> to vector<32x128xf32>
    %46 = vector.shape_cast %43 : vector<32x128xf32> to vector<1x32x128xf32>
    tpu.vector_store %arg8[%c0_18, %c0_19, %c0_20], %46 {strides = array<i32>} : memref<1x32x128xf32, #tpu.memory_space<vmem>>, vector<1x32x128xf32>,
    %c0_21 = arith.constant 0 : index
    %c0_22 = arith.constant 0 : index
    %c0_23 = arith.constant 0 : index
    %47 = vector.load %arg9[%c0_21, %c0_22, %c0_23] : memref<1x128x256xf32, #tpu.memory_space<vmem>>, vector<1x128x256xf32>
    %48 = vector.shape_cast %47 : vector<1x128x256xf32> to vector<128x256xf32>
    %49 = vector.shape_cast %36 : vector<128x256xf32> to vector<1x128x256xf32>
    tpu.vector_store %arg9[%c0_21, %c0_22, %c0_23], %49 {strides = array<i32>} : memref<1x128x256xf32, #tpu.memory_space<vmem>>, vector<1x128x256xf32>,
    return
  }
  func.func @transform_0(%arg0: i32, %arg1: i32) -> (i32, i32, i32) {
    %c0_i32 = arith.constant 0 : i32
    %c0_i32_0 = arith.constant 0 : i32
    %c0_i32_1 = arith.constant 0 : i32
    return %arg0, %c0_i32, %c0_i32_0 : i32, i32, i32
  }
  func.func @transform_1(%arg0: i32, %arg1: i32) -> (i32, i32) {
    %c0_i32 = arith.constant 0 : i32
    %c0_i32_0 = arith.constant 0 : i32
    %c0_i32_1 = arith.constant 0 : i32
    return %c0_i32, %c0_i32_0 : i32, i32
  }
  func.func @transform_2(%arg0: i32, %arg1: i32) -> (i32, i32) {
    %c0_i32 = arith.constant 0 : i32
    %c0_i32_0 = arith.constant 0 : i32
    %c0_i32_1 = arith.constant 0 : i32
    return %c0_i32, %c0_i32_0 : i32, i32
  }
  func.func @transform_3(%arg0: i32, %arg1: i32) -> (i32, i32) {
    %c0_i32 = arith.constant 0 : i32
    %c0_i32_0 = arith.constant 0 : i32
    %c0_i32_1 = arith.constant 0 : i32
    return %c0_i32, %c0_i32_0 : i32, i32
  }
  func.func @transform_4(%arg0: i32, %arg1: i32) -> (i32, i32) {
    %c0_i32 = arith.constant 0 : i32
    %c0_i32_0 = arith.constant 0 : i32
    %c0_i32_1 = arith.constant 0 : i32
    return %c0_i32, %c0_i32_0 : i32, i32
  }
  func.func @transform_5(%arg0: i32, %arg1: i32) -> i32 {
    %c0_i32 = arith.constant 0 : i32
    %c0_i32_0 = arith.constant 0 : i32
    return %c0_i32 : i32
  }
  func.func @transform_6(%arg0: i32, %arg1: i32) -> (i32, i32, i32) {
    %c0_i32 = arith.constant 0 : i32
    %c0_i32_0 = arith.constant 0 : i32
    return %arg0, %c0_i32, %arg1 : i32, i32, i32
  }
  func.func @transform_7(%arg0: i32, %arg1: i32) -> (i32, i32, i32) {
    %c0_i32 = arith.constant 0 : i32
    %c0_i32_0 = arith.constant 0 : i32
    return %arg0, %arg1, %c0_i32 : i32, i32, i32
  }
}

</mosaic_0001>

<bundles_post_ra>
// kernel: tpu_custom_call.1
= control target key start
LH: loop header
LB: loop body
LE: loop exit
PB: predicated region body
PF: predicated region fallthrough
CT: control target
= control target key end

     0   :  { %s2345_s0 = inlined_call_operand.hbm [shape: f32[2,32,256], index: 0, kind: input, shape index: {}]   ;;  %s2346_s1 = inlined_call_operand.vmem [shape: f32[32,4], index: 1, kind: input, shape index: {}]   ;;  %s2347_s2 = inlined_call_operand.vmem [shape: f32[1,4], index: 2, kind: input, shape index: {}]   ;;  %s2348_s3 = inlined_call_operand.vmem [shape: f32[36,32], index: 3, kind: input, shape index: {}]   ;;  %s2349_s4 = inlined_call_operand.vmem [shape: f32[36,1], index: 4, kind: input, shape index: {}]   ;;  %s2350_s5 = inlined_call_operand.<no memory space> [shape: f32[1], index: 5, kind: input, shape index: {}]   ;;  %s2351_s6 = inlined_call_operand.hbm [shape: f32[2,32,256], index: 6, kind: output, shape index: {0}]   ;;  %s2352_s7 = inlined_call_operand.hbm [shape: f32[2,256,256], index: 7, kind: output, shape index: {1}]  }
   0x1   :  { %2358 = sst [smem:[#allocation18_spill]] %s2345_s0 }
   0x2   :  { %2359 = sst [smem:[#allocation19_spill]] %s2346_s1 }
   0x3   :  { %2360 = sst [smem:[#allocation20_spill]] %s2351_s6 }
   0x4   :  { %13 = sst [smem:[#allocation2]] %s2350_s5 }
   0x5   :  { %14 = vsyncpa [#allocation4], 0 }
   0x6   :  { %16 = vsyncpa [#allocation4 + $0x1], 0 }
   0x7   :  { %17 = vsyncpa [#allocation5], 0 }
   0x8   :  { %19 = vsyncpa [#allocation5 + $0x1], 0 }
   0x9   :  { %20 = vsyncpa [#allocation8], 0 }
   0xa   :  { %22 = vsyncpa [#allocation8 + $0x1], 0  ;;  %s1728_s26 = smov 0   ;;  %s1730_s27 = smov 0  }
   0xb   :  { %s1732_s28 = smov 0   ;;  %s1734_s29 = smov 0  }
   0xc   :  { %s1736_s30 = smov 0   ;;  %s1738_s8 = smov 0  }
   0xd   :  { %s1740_s9 = smov 0   ;;  %s1742_s5 = smov 0  }
   0xe   :  { %s1744_s10 = smov 0   ;;  %s1746_s11 = smov 0  }
   0xf   :  { %s1748_s12 = smov 0  }
  0x10 LB: > { %2361 = sst [smem:[#allocation12_spill]] %s1668_s10  ;;  %s1217_s13 = sadd.s32 4294967295, %s1676_s12   ;;  %s1676_s12 = sphi %s1748_s12, %s28_s12   ;;  %s1672_s11 = sphi %s1746_s11, %s2380_s11   ;;  %s1668_s10 = sphi %s1744_s10, %s2379_s10   ;;  %s1664_s5 = sphi %s1742_s5, %s2378_s5   ;;  %s1660_s9 = sphi %s1740_s9, %s2377_s9   ;;  %s1656_s8 = sphi %s1738_s8, %s2386_s8   ;;  %s1652_s30 = sphi %s1736_s30, %s2385_s30   ;;  %s1648_s29 = sphi %s1734_s29, %s2384_s29   ;;  %s1644_s28 = sphi %s1732_s28, %s2383_s28   ;;  %s1640_s27 = sphi %s1730_s27, %s2382_s27   ;;  %s1636_s26 = sphi %s1728_s26, %s2381_s26  }
  0x11   : > { %2362 = sst [smem:[#allocation13_spill]] %s1672_s11  ;;  %s1218_s14 = sadd.s32 4294967294, %s1676_s12  }
  0x12   : > { %s37_s15 = sadd.s32 1, %s1668_s10  ;;  %s40_s16 = sadd.s32 1, %s1672_s11 }
  0x13   : > { %p38_p0 = scmp.ge.s32.totalorder %s37_s15, 2  ;;  %s47_s17 = sadd.s32 1, %s1656_s8 }
  0x14   : > { %p54_p1 = scmp.ne.s32.totalorder %s1656_s8, %s1652_s30  ;;  %p55_p2 = scmp.eq.s32.totalorder %s1676_s12, 0 }
  0x15   : > { %s2388_s15 = smov (%p38_p0, %s37_s15), 0  ;;  %s2390_s16 = smov (!%p38_p0, %s40_s16), %s1672_s11 }
  0x16   : > { %2363 = sst [smem:[#allocation14_spill]] %s2388_s15  ;;  %p1792_p3 = por %p55_p2, %p54_p1 }
  0x17   : > { %p60_p4 = scmp.ne.s32.totalorder %s1652_s30, %s1648_s29  ;;  %p42_p5 = scmp.ge.s32.totalorder %s2390_s16, 2 }
  0x18   : > { %p61_p6 = scmp.eq.s32.totalorder %s1217_s13, 0  ;;  %s176_s19 = ssub.s32 %s1668_s10, %s2388_s15 }
  0x19   : > { %s180_s20 = sadd.s32 1, %s1644_s28  ;;  %s2392_s16 = smov (%p42_p5, %s2390_s16), 0 }
  0x1a   : > { %2365 = sst [smem:[#allocation15_spill]] %s2392_s16  ;;  %p1802_p7 = por %p61_p6, %p60_p4 }
  0x1b   : > { %p190_p8 = scmp.ne.s32.totalorder %s1644_s28, %s1640_s27  ;;  %s44_s22 = ssub.s32 %s1672_s11, %s2392_s16 }
  0x1c   : > { %p191_p9 = scmp.eq.s32.totalorder %s1217_s13, 3  ;;  %p45_p10 = scmp.eq.s32.totalorder %s44_s22, 0 }
  0x1d   : > { %s177_s23 = sor.u32 %s176_s19, %s44_s22  ;;  %p196_p13 = scmp.ne.s32.totalorder %s1640_s27, %s1636_s26 }
  0x1e   : > { %p178_p11 = scmp.eq.s32.totalorder %s177_s23, 0  ;;  %p1810_p12 = por %p191_p9, %p190_p8 }
  0x1f   : > { %s1815_s25 = scalar_select %p45_p10, %s1656_s8, %s47_s17  }
  0x20   : > { %s1818_s29 = scalar_select %p178_p11, %s1644_s28, %s180_s20  }
  0x21   : > { %2368 = sst [smem:[#allocation16_spill]] %s1815_s25  ;;  %p197_p0 = scmp.eq.s32.totalorder %s1218_s14, 3 }
  0x22   : > { %2369 = sst [smem:[#allocation17_spill]] %s1818_s29  ;;  %p1290_p1 = scmp.lt.s32.totalorder %s1676_s12, 4 }
  0x23   : > { %p1823_p2 = por %p197_p0, %p196_p13  ;;  %s260_s13 = sand.u32 1, %s1656_s8  }
  0x24   : > { %s1221_s19 = sshll.u32 %s260_s13, 6  ;;  %s1270_s22 = sshll.u32 %s1672_s11, 6 }
  0x25   : > { %s2371_s0 = sld [smem:[#allocation18_spill]]  ;;  %s264_s17 = scalar_lea.vmem [#allocation3], %s1221_s19 }
  0x26   : > { %s272_s25 = sshll.u32 %s264_s17, 4  ;;  %p1280_p4 = pnand %p1290_p1, %p1792_p3  ;;  %s273_s25 = int_to_ptr.vmem [resolvable:$true] %s272_s25 }
  0x27   : > { %p1224_p5 = scmp.ge.s32.totalorder %s1676_s12, 1  ;;  %s261_s14 = scalar_lea.sflag [#allocation4], %s260_s13 }
  0x28   : > { %s1678_s20 = smov 256   ;;  %s1679_s29 = smov 16  }
  0x29   : > { %p280_p6 = scmp.lt.s32.totalorder %s1676_s12, 5 }
  0x2b   : > { %s269_s10 = scalar_lea.hbm %s2371_s0, %s1270_s22  ;;  %p281_p8 = pnand %p1224_p5, %p280_p6 }
  0x2c   : > { %s270_s6 = sshll.u32 %s269_s10, 4  ;;  %s286_s11 = sand.u32 (!%p281_p8), 1, %s1652_s30   ;;  %s271_s6 = int_to_ptr.hbm [resolvable:$true] %s270_s6 }
  0x2d   : > { %1282 = dma.hbm_to_vmem [thread:$0]  (!%p1280_p4), %s271_s6, 1024, %s273_s25, %s261_s14, %s1678_s20, %s1678_s20, %s1679_s29  }
  0x2e   : > { %284 = sbr.rel (%p281_p8) target bundleno = 1135 (0x46f), region = 44  ;;  %s1225_s16 = sshll.u32 (!%p281_p8), %s286_s11, 6 }
  0x2f   : > { %s287_s22 = scalar_lea.sflag (!%p281_p8), [#allocation4], %s286_s11  ;;  %s290_s19 = scalar_lea.vmem (!%p281_p8), [#allocation3], %s1225_s16 }
  0x33   : > { %1623 = dma.done.wait (%p1802_p7), %s287_s22, 1024  }
  0x34   : > { %1625 = vsyncadd (%p1802_p7), %s287_s22, 4294966272  ;;  %s1228_s10 = sshll.u32 %s1660_s9, 7  ;;  %v334_v1 = vld [vmem:[%s290_s19 + $0x20] sm:$0xff]  ;;  %v336_v2 = vld [vmem:[%s290_s19 + $0x30] sm:$0xff]  ;;  %vm388_vm0 = vcmask 261120   ;;  %v1680_v23 = vmov 0  }
  0x35   : > { %s338_s18 = sshra.s32 %s1228_s10, 7  ;;  %v356_v3 = vpack.c.bf16 %v336_v2, %v334_v1  ;;  %v330_v4 = vld [vmem:[%s290_s19] sm:$0xff]  ;;  %v332_v5 = vld [vmem:[%s290_s19 + $0x10] sm:$0xff]  ;;  %v347_v8 = vld [vmem:[%s2348_s3 + $0x8] sm:$0xff]  ;;  %1388 = vset.pattern.permute.xlu1 %v1680_v23  ;;  %1389 = vset.pattern.permute.xlu2 %v1680_v23  ;;  %s2372_s1 = sld [smem:[#allocation19_spill]]  ;;  %vm602_vm1 = vcmask 1041408  }
  0x36   : > { %s1229_s13 = sshll.u32 %s338_s18, 3  ;;  %v354_v6 = vpack.c.bf16 %v332_v5, %v330_v4  ;;  %v346_v7 = vld [vmem:[%s2348_s3] sm:$0xff]  ;;  %v335_v11 = vld [vmem:[%s290_s19 + $0x28] sm:$0xff]  ;;  %v337_v12 = vld [vmem:[%s290_s19 + $0x38] sm:$0xff]  ;;  %vm577_vm2 = vcmask 31744   ;;  %s2150_s21 = sand.u32 1, %s1640_s27  }
  0x37   : > { %s1842_s23 = scalar_lea.vmem %s290_s19, %s1229_s13 [#allocation3]  ;;  %404 = vmatpush.bf16.msra.mxu1 %v356_v3  ;;  %v351_v10 = vpack.c.bf16 %v347_v8, %v346_v7  ;;  %v331_v13 = vld [vmem:[%s290_s19 + $0x8] sm:$0xff]  ;;  %v357_v14 = vpack.c.bf16 %v337_v12, %v335_v11  ;;  %v333_v15 = vld [vmem:[%s290_s19 + $0x18] sm:$0xff]  ;;  %v348_v18 = vld [vmem:[%s2348_s3 + $0x10] sm:$0xff]  ;;  %s1227_s25 = sshll.u32 %s2150_s21, 8 }
  0x38   : > { %v342_v0 = vld [vmem:[%s1842_s23] sm:$0xff]  ;;  %v343_v9 = vld [vmem:[%s1842_s23 + $0x10] sm:$0xff]  ;;  %v355_v17 = vpack.c.bf16 %v333_v15, %v331_v13  ;;  %v349_v19 = vld [vmem:[%s2348_s3 + $0x18] sm:$0xff]  ;;  %s2159_s29 = scalar_lea.vmem [#allocation7], %s1227_s25  ;;  %s1271_s17 = sshll.u32 %s1660_s9, 5 }
  0x39   : > { %444 = vxpose.xlu0.b32.start [1/4] (short) %v342_v0, 128  ;;  %v344_v16 = vld [vmem:[%s1842_s23 + $0x20] sm:$0xff]  ;;  %v345_v20 = vld [vmem:[%s1842_s23 + $0x30] sm:$0xff]  ;;  %v352_v21 = vpack.c.bf16 %v349_v19, %v348_v18  ;;  %s1266_s14 = sshll.u32 %s1664_s5, 6  ;;  %s1090_s22 = sshll.u32 %s2159_s29, 4  ;;  %s1091_s22 = int_to_ptr.vmem [resolvable:$true] %s1090_s22 }
  0x3a   : > { %v362_v22 = vld [vmem:[%s2349_s4 + $0x20] sm:$0xf]  ;;  %s1087_s20 = sadd.s32 %s1271_s17, %s1266_s14  ;;  %s1057_s6 = scalar_lea.sflag [#allocation8], %s2150_s21 }
  0x3b   : > { %405 = vmatpush.bf16.msra.mxu1 %v354_v6  ;;  %385 = vperm.xlu1 %1388, %v362_v22   ;;  %v350_v24 = vld [vmem:[%s2348_s3 + $0x20] sm:$0xf]  ;;  %v486_v26 = vld [vmem:[%s2372_s1 + $0x10] sm:$0xff]  ;;  %v487_v27 = vld [vmem:[%s2372_s1 + $0x18] sm:$0xff]  ;;  %s1267_s16 = sshll.u32 %s1087_s20, 3  ;;  %s1542_s17 = scalar_lea.hbm %s2352_s7, 1024 }
  0x3c   : > { %v353_v25 = vpack.c.bf16 %v350_v24, %v350_v24  ;;  %v484_v28 = vld [vmem:[%s2372_s1] sm:$0xff]  ;;  %v489_v29 = vpack.c.bf16 %v487_v27, %v486_v26  ;;  %v485_v30 = vld [vmem:[%s2372_s1 + $0x8] sm:$0xff]  ;;  %s1089_s18 = scalar_lea.hbm %s2352_s7, %s1267_s16 }
  0x3d   : > { %v488_v31 = vpack.c.bf16 %v485_v30, %v484_v28  ;;  %v1391_v12 = vld [vmem:[%s2347_s2] ss:$0 sm:$0xff]  ;;  %s1092_s13 = sshll.u32 %s1089_s18, 4  ;;  %s1093_s13 = int_to_ptr.hbm [resolvable:$true] %s1092_s13 }
  0x3e   : > { %1230 = vmatmul.msk.bf16.vlgmr.msra.gmra.mxu1 %vm388_vm0, %v351_v10  ;;  %524 = vmatpush.bf16.msra.mxu2 %v489_v29  ;;  %s1536_s11 = sshra.s32 %s1093_s13, 4  ;;  %s1537_s11 = int_to_ptr.hbm [resolvable:$true] %s1536_s11 }
  0x3f   : > { %427 = vmatpush.bf16.msrb.mxu1 %v357_v14  ;;  %s1538_s25 = scalar_lea.hbm %s1537_s11, 256  ;;  %p1543_p10 = scmp.lt.s32.totalorder %s1537_s11, %s2352_s7 }
  0x40   : > { %p1539_p3 = scmp.ne.s32.totalorder %s1537_s11, %s1538_s25  ;;  %p1544_p11 = scmp.lt.s32.totalorder %s1542_s17, %s1538_s25 }
  0x41   : > { %445 = vxpose.xlu0.b32.cont [2/4] (short) %v343_v9, 128 }
  0x42   : > { %525 = vmatpush.bf16.msra.mxu2 %v488_v31  ;;  %p1540_p7 = pnand %p1539_p3, %p1810_p12  ;;  %p1545_p13 = por %p1544_p11, %p1543_p10 }
  0x43   : > { %428 = vmatpush.bf16.msrb.mxu1 %v355_v17 }
  0x44   : > { %p1541_p9 = pneg %p1540_p7 }
  0x46   : > { %p1546_p0 = pnand %p1545_p13, %p1541_p9 }
  0x49   : > { %446 = vxpose.xlu0.b32.cont [3/4] (short) %v344_v16, 128 }
  0x4e   : > { %1231 = vmatmul.msk.bf16.gmra.mxu1 %vm388_vm0, %v352_v21 }
  0x51   : > { %447 = vxpose.xlu0.b32.end [4/4] (short) %v345_v20, 128 }
  0x5e   : > { %1232 = vmatmul.msk.bf16.gmra.mxu1 %vm388_vm0, %v353_v25 }
  0x6e   : > { %1233 = vmatmul.msk.bf16.vlgmr.msrb.gmra.mxu1 %vm388_vm0, %v351_v10 }
  0x7e   : > { %1234 = vmatmul.msk.bf16.gmra.mxu1 %vm388_vm0, %v352_v21 }
  0x8e   : > { %1235 = vmatmul.msk.bf16.gmra.mxu1 %vm388_vm0, %v353_v25 }
  0xad   : > { %v386_v54 = vpop.permute.xlu1 %385 }
  0xb8   : > { %1390 = vset.pattern.permute.xlu0 %v1680_v23 }
  0xbb   : > { %v1886_v39 = vpop.f32.mrf.mxu1 }
  0xc3   : > { %v1888_v42 = vpop.f32.mrf.mxu1 }
  0xcb   : > { %v1891_v44 = vpop.f32.mrf.mxu1 }
  0xd3   : > { %v1893_v47 = vpop.f32.mrf.mxu1 }
  0xdb   : > { %v417_v49 = vpop.f32.mrf.mxu1 }
  0xdc   : > { %v418_v55 = vadd.f32 %v417_v49, %v386_v54 }
  0xdd   : > { %v460_v32 = vpop.trf.xlu0 }
  0xde   : > { %v575_v57 = vpack.c.bf16 %v418_v55, %v418_v55 }
  0xe0   : > { %v604_v58 = vsel %vm602_vm1, %v575_v57, 0 }
  0xe1   : > { %616 = vmatpush.bf16.msra.mxu0 %v604_v58  ;;  %1272 = vmatpush.bf16.msra.mxu3 %v604_v58 }
  0xe3   : > { %v419_v52 = vpop.f32.mrf.mxu1 }
  0xe5   : > { %v461_v33 = vpop.trf.xlu0 }
  0xe6   : > { %v476_v34 = vpack.c.bf16 %v461_v33, %v460_v32 }
  0xe8   : > { %1236 = vmatmul.msk.bf16.vlgmr.msra.gmra.mxu2 %vm388_vm0, %v476_v34 }
  0xeb   : > { %v1897_v56 = vpop.f32.mrf.mxu1 }
  0xed   : > { %v462_v35 = vpop.trf.xlu0 }
  0xf3   : > { %v1900_v61 = vpop.f32.mrf.mxu1 }
  0xf5   : > { %v463_v36 = vpop.trf.xlu0 }
  0xf6   : > { %v477_v37 = vpack.c.bf16 %v463_v36, %v462_v35 }
  0xf8   : > { %1237 = vmatmul.msk.bf16.gmra.mxu2 %vm388_vm0, %v477_v37 }
  0xfb   : > { %v1903_v63 = vpop.f32.mrf.mxu1 }
  0xfd   : > { %v464_v38 = vpop.trf.xlu0 }
 0x103   : > { %v1905_v2 = vpop.f32.mrf.mxu1 }
 0x105   : > { %v465_v40 = vpop.trf.xlu0 }
 0x106   : > { %v478_v41 = vpack.c.bf16 %v465_v40, %v464_v38 }
 0x108   : > { %1238 = vmatmul.msk.bf16.gmra.mxu2 %vm388_vm0, %v478_v41 }
 0x10b   : > { %v440_v4 = vpop.f32.mrf.mxu1 }
 0x10c   : > { %v441_v5 = vadd.f32 %v440_v4, %v386_v54 }
 0x10d   : > { %v466_v43 = vpop.trf.xlu0 }
 0x10e   : > { %v576_v6 = vpack.c.bf16 %v441_v5, %v441_v5 }
 0x110   : > { %v607_v7 = vsel %vm602_vm1, %v576_v6, 0 }
 0x111   : > { %665 = vmatpush.bf16.msrb.mxu0 %v607_v7 }
 0x113   : > { %v442_v10 = vpop.f32.mrf.mxu1 }
 0x115   : > { %v467_v45 = vpop.trf.xlu0 }
 0x116   : > { %v479_v46 = vpack.c.bf16 %v467_v45, %v466_v43 }
 0x118   : > { %1239 = vmatmul.msk.bf16.gmra.mxu2 %vm388_vm0, %v479_v46 }
 0x11d   : > { %v468_v48 = vpop.trf.xlu0 }
 0x125   : > { %v469_v50 = vpop.trf.xlu0 }
 0x126   : > { %v480_v51 = vpack.c.bf16 %v469_v50, %v468_v48 }
 0x128   : > { %1240 = vmatmul.msk.bf16.gmra.mxu2 %vm388_vm0, %v480_v51 }
 0x12d   : > { %v470_v53 = vpop.trf.xlu0 }
 0x135   : > { %v471_v59 = vpop.trf.xlu0 }
 0x136   : > { %v481_v60 = vpack.c.bf16 %v471_v59, %v470_v53 }
 0x138   : > { %1241 = vmatmul.msk.bf16.gmra.mxu2 %vm388_vm0, %v481_v60 }
 0x13d   : > { %v472_v62 = vpop.trf.xlu0 }
 0x145   : > { %v473_v0 = vpop.trf.xlu0 }
 0x146   : > { %v482_v1 = vpack.c.bf16 %v473_v0, %v472_v62 }
 0x148   : > { %1242 = vmatmul.msk.bf16.gmra.mxu2 %vm388_vm0, %v482_v1 }
 0x14d   : > { %v474_v3 = vpop.trf.xlu0 }
 0x155   : > { %v475_v8 = vpop.trf.xlu0 }
 0x156   : > { %v483_v9 = vpack.c.bf16 %v475_v8, %v474_v3 }
 0x158   : > { %1243 = vmatmul.msk.bf16.gmra.mxu2 %vm388_vm0, %v483_v9 }
 0x16b   : > { %v527_v11 = vpop.f32.mrf.mxu2 }
 0x16c   : > { %v528_v14 = vadd.f32 %v1391_v12, %v527_v11 }
 0x173   : > { %v529_v13 = vpop.f32.mrf.mxu2 }
 0x174   : > { %v530_v15 = vadd.f32 %v1391_v12, %v529_v13 }
 0x176   : > { %v567_v16 = vpack.c.bf16 %v530_v15, %v528_v14 }
 0x178   : > { %1244 = vmatmul.msk.bf16.vlgmr.msra.gmra.mxu0 %vm577_vm2, %v567_v16 }
 0x17b   : > { %v532_v17 = vpop.f32.mrf.mxu2 }
 0x17c   : > { %v533_v19 = vadd.f32 %v1391_v12, %v532_v17 }
 0x183   : > { %v534_v18 = vpop.f32.mrf.mxu2 }
 0x184   : > { %v535_v20 = vadd.f32 %v1391_v12, %v534_v18 }
 0x186   : > { %v568_v21 = vpack.c.bf16 %v535_v20, %v533_v19 }
 0x188   : > { %1245 = vmatmul.msk.bf16.vlgmr.msra.gmra.mxu3 %vm577_vm2, %v568_v21  ;;  %1252 = vmatmul.msk.bf16.vlgmr.msrb.gmra.mxu0 %vm577_vm2, %v567_v16 }
 0x18b   : > { %v537_v22 = vpop.f32.mrf.mxu2 }
 0x18c   : > { %v538_v24 = vadd.f32 %v1391_v12, %v537_v22 }
 0x193   : > { %v539_v23 = vpop.f32.mrf.mxu2 }
 0x194   : > { %v540_v25 = vadd.f32 %v1391_v12, %v539_v23 }
 0x196   : > { %v569_v26 = vpack.c.bf16 %v540_v25, %v538_v24 }
 0x198   : > { %1246 = vmatmul.msk.bf16.gmra.mxu3 %vm577_vm2, %v569_v26  ;;  %1253 = vmatmul.msk.bf16.gmra.mxu0 %vm577_vm2, %v568_v21 }
 0x19b   : > { %v542_v27 = vpop.f32.mrf.mxu2 }
 0x19c   : > { %v543_v29 = vadd.f32 %v1391_v12, %v542_v27 }
 0x1a3   : > { %v544_v28 = vpop.f32.mrf.mxu2 }
 0x1a4   : > { %v545_v30 = vadd.f32 %v1391_v12, %v544_v28 }
 0x1a6   : > { %v570_v31 = vpack.c.bf16 %v545_v30, %v543_v29 }
 0x1a8   : > { %1247 = vmatmul.msk.bf16.gmra.mxu3 %vm577_vm2, %v570_v31  ;;  %1254 = vmatmul.msk.bf16.gmra.mxu0 %vm577_vm2, %v569_v26 }
 0x1ab   : > { %v547_v32 = vpop.f32.mrf.mxu2 }
 0x1ac   : > { %v548_v34 = vadd.f32 %v1391_v12, %v547_v32 }
 0x1b3   : > { %v549_v33 = vpop.f32.mrf.mxu2 }
 0x1b4   : > { %v550_v35 = vadd.f32 %v1391_v12, %v549_v33 }
 0x1b6   : > { %v571_v36 = vpack.c.bf16 %v550_v35, %v548_v34 }
 0x1b8   : > { %1248 = vmatmul.msk.bf16.gmra.mxu3 %vm577_vm2, %v571_v36  ;;  %1255 = vmatmul.msk.bf16.gmra.mxu0 %vm577_vm2, %v570_v31 }
 0x1bb   : > { %v552_v37 = vpop.f32.mrf.mxu2 }
 0x1bc   : > { %v553_v40 = vadd.f32 %v1391_v12, %v552_v37 }
 0x1c3   : > { %v554_v38 = vpop.f32.mrf.mxu2 }
 0x1c4   : > { %v555_v41 = vadd.f32 %v1391_v12, %v554_v38 }
 0x1c6   : > { %v572_v43 = vpack.c.bf16 %v555_v41, %v553_v40 }
 0x1c8   : > { %1249 = vmatmul.msk.bf16.gmra.mxu3 %vm577_vm2, %v572_v43  ;;  %1256 = vmatmul.msk.bf16.gmra.mxu0 %vm577_vm2, %v571_v36 }
 0x1cb   : > { %v557_v45 = vpop.f32.mrf.mxu2 }
 0x1cc   : > { %v558_v46 = vadd.f32 %v1391_v12, %v557_v45 }
 0x1d3   : > { %v559_v48 = vpop.f32.mrf.mxu2 }
 0x1d4   : > { %v560_v49 = vadd.f32 %v1391_v12, %v559_v48 }
 0x1d6   : > { %v573_v50 = vpack.c.bf16 %v560_v49, %v558_v46 }
 0x1d8   : > { %1250 = vmatmul.msk.bf16.gmra.mxu3 %vm577_vm2, %v573_v50  ;;  %1257 = vmatmul.msk.bf16.gmra.mxu0 %vm577_vm2, %v572_v43 }
 0x1db   : > { %v562_v51 = vpop.f32.mrf.mxu2 }
 0x1dc   : > { %v563_v52 = vadd.f32 %v1391_v12, %v562_v51 }
 0x1e3   : > { %v564_v53 = vpop.f32.mrf.mxu2 }
 0x1e4   : > { %v565_v54 = vadd.f32 %v1391_v12, %v564_v53 }
 0x1e6   : > { %v574_v55 = vpack.c.bf16 %v565_v54, %v563_v52 }
 0x1e8   : > { %1251 = vmatmul.msk.bf16.gmra.mxu3 %vm577_vm2, %v574_v55  ;;  %1258 = vmatmul.msk.bf16.gmra.mxu0 %vm577_vm2, %v573_v50 }
 0x1f5   : > { %v1928_v57 = vpop.f32.mrf.mxu0 }
 0x1f8   : > { %1259 = vmatmul.msk.bf16.gmra.mxu0 %vm577_vm2, %v574_v55 }
 0x1fd   : > { %v1931_v58 = vpop.f32.mrf.mxu0 }
 0x205   : > { %v1933_v59 = vpop.f32.mrf.mxu0 }
 0x206   : > { %v707_v46 = vmax.f32 %v1928_v57, %v1933_v59 }
 0x20b   : > { %v1935_v60 = vpop.f32.mrf.mxu3 }
 0x20d   : > { %v1937_v62 = vpop.f32.mrf.mxu0 }
 0x20e   : > { %v710_v41 = vmax.f32 %v1931_v58, %v1937_v62 }
 0x213   : > { %v1939_v0 = vpop.f32.mrf.mxu3 }
 0x215   : > { %v1941_v1 = vpop.f32.mrf.mxu0 }
 0x216   : > { %v713_v45 = vmax.f32 %v1935_v60, %v1941_v1 }
 0x21b   : > { %v1943_v3 = vpop.f32.mrf.mxu3 }
 0x21d   : > { %v1945_v4 = vpop.f32.mrf.mxu0 }
 0x21e   : > { %v716_v40 = vmax.f32 %v1939_v0, %v1945_v4 }
 0x223   : > { %v1947_v5 = vpop.f32.mrf.mxu3 }
 0x225   : > { %v1949_v6 = vpop.f32.mrf.mxu0 }
 0x226   : > { %v719_v43 = vmax.f32 %v1943_v3, %v1949_v6 }
 0x22b   : > { %v1951_v7 = vpop.f32.mrf.mxu3 }
 0x22d   : > { %v1953_v8 = vpop.f32.mrf.mxu0 }
 0x22e   : > { %v722_v35 = vmax.f32 %v1947_v5, %v1953_v8 }
 0x233   : > { %v1955_v9 = vpop.f32.mrf.mxu3 }
 0x235   : > { %v1957_v10 = vpop.f32.mrf.mxu0 }
 0x236   : > { %v725_v29 = vmax.f32 %v1951_v7, %v1957_v10 }
 0x23b   : > { %v638_v11 = vpop.f32.mrf.mxu3 }
 0x23d   : > { %v1959_v12 = vpop.f32.mrf.mxu0 }
 0x23e   : > { %v728_v13 = vmax.f32 %v1955_v9, %v1959_v12 }
 0x240   : > { %729 = vmax.xlane.f32.xlu1 %v728_v13 }
 0x243   : > { %v1963_v14 = vpop.f32.mrf.mxu3 }
 0x245   : > { %v687_v15 = vpop.f32.mrf.mxu0 }
 0x246   : > { %v731_v22 = vmax.f32 %v638_v11, %v687_v15 }
 0x24b   : > { %v643_v16 = vpop.f32.mrf.mxu3 }
 0x24d   : > { %v689_v17 = vpop.f32.mrf.mxu0 }
 0x24e   : > { %v734_v26 = vmax.f32 %v1963_v14, %v689_v17 }
 0x253   : > { %v1965_v20 = vpop.f32.mrf.mxu3 }
 0x255   : > { %v692_v18 = vpop.f32.mrf.mxu0 }
 0x256   : > { %v737_v19 = vmax.f32 %v643_v16, %v692_v18 }
 0x258   : > { %738 = vmax.xlane.f32.xlu2 %v737_v19 }
 0x25b   : > { %v1971_v24 = vpop.f32.mrf.mxu3 }
 0x25d   : > { %v1967_v21 = vpop.f32.mrf.mxu0 }
 0x25e   : > { %v740_v23 = vmax.f32 %v1965_v20, %v1967_v21 }
 0x260   : > { %732 = vmax.xlane.f32.xlu2 %v731_v22  ;;  %741 = vmax.xlane.f32.xlu0 %v740_v23 }
 0x263   : > { %v1976_v27 = vpop.f32.mrf.mxu3 }
 0x265   : > { %v1973_v25 = vpop.f32.mrf.mxu0 }
 0x266   : > { %v743_v32 = vmax.f32 %v1971_v24, %v1973_v25 }
 0x268   : > { %735 = vmax.xlane.f32.xlu2 %v734_v26 }
 0x26b   : > { %v1982_v30 = vpop.f32.mrf.mxu3 }
 0x26d   : > { %v1978_v28 = vpop.f32.mrf.mxu0 }
 0x26e   : > { %v746_v34 = vmax.f32 %v1976_v27, %v1978_v28 }
 0x270   : > { %726 = vmax.xlane.f32.xlu2 %v725_v29 }
 0x273   : > { %v1996_v37 = vpop.f32.mrf.mxu3 }
 0x275   : > { %v1984_v31 = vpop.f32.mrf.mxu0 }
 0x276   : > { %v749_v33 = vmax.f32 %v1982_v30, %v1984_v31 }
 0x278   : > { %744 = vmax.xlane.f32.xlu2 %v743_v32  ;;  %750 = vmax.xlane.f32.xlu1 %v749_v33 }
 0x27d   : > { %v1994_v36 = vpop.f32.mrf.mxu0 }
 0x27e   : > { %v752_v38 = vmax.f32 %v1996_v37, %v1994_v36 }
 0x280   : > { %747 = vmax.xlane.f32.xlu2 %v746_v34  ;;  %723 = vmax.xlane.f32.xlu1 %v722_v35 }
 0x288   : > { %717 = vmax.xlane.f32.xlu1 %v716_v40  ;;  %753 = vmax.xlane.f32.xlu2 %v752_v38 }
 0x290   : > { %711 = vmax.xlane.f32.xlu1 %v710_v41  ;;  %720 = vmax.xlane.f32.xlu2 %v719_v43 }
 0x298   : > { %714 = vmax.xlane.f32.xlu2 %v713_v45 }
 0x2a0   : > { %708 = vmax.xlane.f32.xlu2 %v707_v46 }
 0x2cb   : > { %v739_v48 = vpop.xlane.xlu2 %738 }
 0x2cc   : > { %v775_v52 = vsub.f32 %v643_v16, %v739_v48  ;;  %v776_v55 = vsub.f32 %v692_v18, %v739_v48 }
 0x2ce   : > { %v827_v13 = vmul.f32 1.442695, %v775_v52  ;;  %v829_v19 = vmul.f32 1.442695, %v776_v55 }
 0x2d3   : > { %v733_v49 = vpop.xlane.xlu2 %732  ;;  %v742_v22 = vpop.xlane.xlu0 %741 }
 0x2d4   : > { %v771_v50 = vsub.f32 %v638_v11, %v733_v49  ;;  %v772_v51 = vsub.f32 %v687_v15, %v733_v49  ;;  %v777_v33 = vsub.f32 %v1965_v20, %v742_v22  ;;  %v778_v18 = vsub.f32 %v1967_v21, %v742_v22 }
 0x2d6   : > { %v819_v53 = vmul.f32 1.442695, %v771_v50  ;;  %v821_v54 = vmul.f32 1.442695, %v772_v51  ;;  %v831_v35 = vmul.f32 1.442695, %v777_v33 }
 0x2d8   : > { %1392 = vpow2.f32 %v819_v53 }
 0x2d9   : > { %1394 = vpow2.f32 %v821_v54 }
 0x2da   : > { %1396 = vpow2.f32 %v827_v13 }
 0x2db   : > { %v736_v23 = vpop.xlane.xlu2 %735  ;;  %1398 = vpow2.f32 %v829_v19 }
 0x2dc   : > { %v773_v26 = vsub.f32 %v1963_v14, %v736_v23  ;;  %v774_v29 = vsub.f32 %v689_v17, %v736_v23  ;;  %v2019_v14 = vpop.xlane.xlu1 %729  ;;  %v833_v17 = vmul.f32 1.442695, %v778_v18 }
 0x2de   : > { %v2011_v32 = vpop.eup %1392  ;;  %v823_v11 = vmul.f32 1.442695, %v773_v26  ;;  %v825_v15 = vmul.f32 1.442695, %v774_v29 }
 0x2df   : > { %v2014_v16 = vpop.eup %1394 }
 0x2e0   : > { %1400 = vpow2.f32 %v823_v11  ;;  %v875_v34 = vadd.f32 %v2014_v16, %v2011_v32  ;;  %v2021_v40 = vpop.eup %1396 }
 0x2e1   : > { %1402 = vpow2.f32 %v825_v15  ;;  %v2023_v20 = vpop.eup %1398 }
 0x2e2   : > { %876 = vadd.xlane.f32.xlu2 %v875_v34  ;;  %1404 = vpow2.f32 %v831_v35  ;;  %v881_v45 = vadd.f32 %v2023_v20, %v2021_v40 }
 0x2e3   : > { %v727_v38 = vpop.xlane.xlu2 %726  ;;  %1406 = vpow2.f32 %v833_v17 }
 0x2e4   : > { %v767_v33 = vsub.f32 %v1951_v7, %v727_v38  ;;  %v768_v15 = vsub.f32 %v1957_v10, %v727_v38 }
 0x2e6   : > { %v2025_v41 = vpop.eup %1400 }
 0x2e7   : > { %v2027_v43 = vpop.eup %1402 }
 0x2e8   : > { %v878_v21 = vadd.f32 %v2027_v43, %v2025_v41  ;;  %v2033_v49 = vpop.eup %1404 }
 0x2e9   : > { %v2037_v52 = vpop.eup %1406 }
 0x2ea   : > { %879 = vadd.xlane.f32.xlu1 %v878_v21  ;;  %882 = vadd.xlane.f32.xlu2 %v881_v45  ;;  %v884_v19 = vadd.f32 %v2037_v52, %v2033_v49 }
 0x2eb   : > { %v745_v46 = vpop.xlane.xlu2 %744  ;;  %v751_v48 = vpop.xlane.xlu1 %750 }
 0x2ec   : > { %v779_v50 = vsub.f32 %v1971_v24, %v745_v46  ;;  %v780_v51 = vsub.f32 %v1973_v25, %v745_v46  ;;  %v783_v55 = vsub.f32 %v1982_v30, %v751_v48  ;;  %v784_v13 = vsub.f32 %v1984_v31, %v751_v48 }
 0x2ed   : > { %v769_v48 = vsub.f32 %v1955_v9, %v2019_v14 }
 0x2ee   : > { %v835_v53 = vmul.f32 1.442695, %v779_v50  ;;  %v837_v54 = vmul.f32 1.442695, %v780_v51  ;;  %v843_v22 = vmul.f32 1.442695, %v783_v55 }
 0x2ef   : > { %v845_v23 = vmul.f32 1.442695, %v784_v13  ;;  %v815_v55 = vmul.f32 1.442695, %v769_v48 }
 0x2f0   : > { %1408 = vpow2.f32 %v835_v53 }
 0x2f1   : > { %1410 = vpow2.f32 %v837_v54 }
 0x2f2   : > { %885 = vadd.xlane.f32.xlu1 %v884_v19  ;;  %1412 = vpow2.f32 %v843_v22 }
 0x2f3   : > { %v748_v26 = vpop.xlane.xlu2 %747  ;;  %1414 = vpow2.f32 %v845_v23  ;;  %v724_v51 = vpop.xlane.xlu1 %723 }
 0x2f4   : > { %v781_v24 = vsub.f32 %v1976_v27, %v748_v26  ;;  %v782_v25 = vsub.f32 %v1978_v28, %v748_v26  ;;  %v811_v27 = vmul.f32 1.442695, %v767_v33  ;;  %v813_v28 = vmul.f32 1.442695, %v768_v15 }
 0x2f5   : > { %v765_v23 = vsub.f32 %v1947_v5, %v724_v51 }
 0x2f6   : > { %v2045_v29 = vpop.eup %1408  ;;  %v839_v30 = vmul.f32 1.442695, %v781_v24  ;;  %v841_v31 = vmul.f32 1.442695, %v782_v25 }
 0x2f7   : > { %v2048_v11 = vpop.eup %1410 }
 0x2f8   : > { %1416 = vpow2.f32 %v839_v30  ;;  %v887_v18 = vadd.f32 %v2048_v11, %v2045_v29  ;;  %v2053_v35 = vpop.eup %1412 }
 0x2f9   : > { %1418 = vpow2.f32 %v841_v31  ;;  %v2057_v21 = vpop.eup %1414 }
 0x2fa   : > { %888 = vadd.xlane.f32.xlu2 %v887_v18  ;;  %1420 = vpow2.f32 %v811_v27 }
 0x2fb   : > { %v754_v34 = vpop.xlane.xlu2 %753  ;;  %1422 = vpow2.f32 %v813_v28  ;;  %v718_v30 = vpop.xlane.xlu1 %717 }
 0x2fc   : > { %v785_v7 = vsub.f32 %v1996_v37, %v754_v34  ;;  %v786_v17 = vsub.f32 %v1994_v36, %v754_v34  ;;  %v893_v37 = vadd.f32 %v2057_v21, %v2053_v35  ;;  %v770_v36 = vsub.f32 %v1959_v12, %v2019_v14 }
 0x2fd   : > { %v766_v12 = vsub.f32 %v1953_v8, %v724_v51  ;;  %v761_v27 = vsub.f32 %v1939_v0, %v718_v30 }
 0x2fe   : > { %v2059_v45 = vpop.eup %1416  ;;  %v847_v10 = vmul.f32 1.442695, %v785_v7  ;;  %v849_v46 = vmul.f32 1.442695, %v786_v17  ;;  %v817_v22 = vmul.f32 1.442695, %v770_v36  ;;  %v762_v17 = vsub.f32 %v1945_v4, %v718_v30 }
 0x2ff   : > { %v2061_v38 = vpop.eup %1418  ;;  %v809_v5 = vmul.f32 1.442695, %v766_v12 }
 0x300   : > { %v890_v50 = vadd.f32 %v2061_v38, %v2059_v45  ;;  %1424 = vpow2.f32 %v847_v10  ;;  %v2071_v54 = vpop.eup %1420  ;;  %v801_v48 = vmul.f32 1.442695, %v762_v17 }
 0x301   : > { %1426 = vpow2.f32 %v849_v46  ;;  %v2075_v19 = vpop.eup %1422 }
 0x302   : > { %891 = vadd.xlane.f32.xlu1 %v890_v50  ;;  %894 = vadd.xlane.f32.xlu2 %v893_v37  ;;  %1428 = vpow2.f32 %v815_v55  ;;  %v869_v25 = vadd.f32 %v2075_v19, %v2071_v54 }
 0x303   : > { %v721_v53 = vpop.xlane.xlu2 %720  ;;  %1430 = vpow2.f32 %v817_v22 }
 0x304   : > { %v763_v9 = vsub.f32 %v1943_v3, %v721_v53  ;;  %v764_v13 = vsub.f32 %v1949_v6, %v721_v53  ;;  %v807_v3 = vmul.f32 1.442695, %v765_v23  ;;  %v712_v53 = vpop.xlane.xlu1 %711 }
 0x305   : > { %v757_v23 = vsub.f32 %v1931_v58, %v712_v53 }
 0x306   : > { %v803_v26 = vmul.f32 1.442695, %v763_v9  ;;  %v805_v14 = vmul.f32 1.442695, %v764_v13  ;;  %v2079_v24 = vpop.eup %1424 }
 0x307   : > { %v2083_v33 = vpop.eup %1426 }
 0x308   : > { %1432 = vpow2.f32 %v803_v26  ;;  %v896_v6 = vadd.f32 %v2083_v33, %v2079_v24  ;;  %v2089_v18 = vpop.eup %1428 }
 0x309   : > { %1434 = vpow2.f32 %v805_v14  ;;  %v2092_v7 = vpop.eup %1430  ;;  %v791_v14 = vmul.f32 1.442695, %v757_v23 }
 0x30a   : > { %870 = vadd.xlane.f32.xlu2 %v869_v25  ;;  %897 = vadd.xlane.f32.xlu1 %v896_v6  ;;  %1436 = vpow2.f32 %v807_v3 }
 0x30b   : > { %v715_v8 = vpop.xlane.xlu2 %714  ;;  %1438 = vpow2.f32 %v809_v5 }
 0x30c   : > { %v759_v31 = vsub.f32 %v1935_v60, %v715_v8  ;;  %v760_v15 = vsub.f32 %v1941_v1, %v715_v8  ;;  %v799_v60 = vmul.f32 1.442695, %v761_v27  ;;  %v872_v1 = vadd.f32 %v2092_v7, %v2089_v18  ;;  %v360_v27 = vld [vmem:[%s2349_s4 + $0x10] sm:$0xff] }
 0x30e   : > { %v795_v28 = vmul.f32 1.442695, %v759_v31  ;;  %v797_v34 = vmul.f32 1.442695, %v760_v15  ;;  %v2095_v10 = vpop.eup %1432  ;;  %v358_v15 = vld [vmem:[%s2349_s4] sm:$0xff] }
 0x30f   : > { %v2097_v46 = vpop.eup %1434 }
 0x310   : > { %1440 = vpow2.f32 %v795_v28  ;;  %v863_v0 = vadd.f32 %v2097_v46, %v2095_v10  ;;  %v2103_v37 = vpop.eup %1436  ;;  %v359_v28 = vld [vmem:[%s2349_s4 + $0x8] sm:$0xff] }
 0x311   : > { %1442 = vpow2.f32 %v797_v34  ;;  %v2107_v51 = vpop.eup %1438  ;;  %v361_v34 = vld [vmem:[%s2349_s4 + $0x18] sm:$0xff] }
 0x312   : > { %873 = vadd.xlane.f32.xlu1 %v872_v1  ;;  %864 = vadd.xlane.f32.xlu2 %v863_v0  ;;  %1444 = vpow2.f32 %v799_v60 }
 0x313   : > { %v709_v50 = vpop.xlane.xlu2 %708  ;;  %1446 = vpow2.f32 %v801_v48 }
 0x314   : > { %v755_v4 = vsub.f32 %v1928_v57, %v709_v50  ;;  %v756_v36 = vsub.f32 %v1933_v59, %v709_v50  ;;  %v758_v57 = vsub.f32 %v1937_v62, %v712_v53  ;;  %v866_v59 = vadd.f32 %v2107_v51, %v2103_v37 }
 0x316   : > { %v2109_v55 = vpop.eup %1440  ;;  %v787_v9 = vmul.f32 1.442695, %v755_v4  ;;  %v789_v13 = vmul.f32 1.442695, %v756_v36  ;;  %v793_v3 = vmul.f32 1.442695, %v758_v57 }
 0x317   : > { %v2111_v22 = vpop.eup %1442 }
 0x318   : > { %1448 = vpow2.f32 %v787_v9  ;;  %v857_v26 = vadd.f32 %v2111_v22, %v2109_v55  ;;  %v2119_v12 = vpop.eup %1444 }
 0x319   : > { %1450 = vpow2.f32 %v789_v13  ;;  %v2121_v25 = vpop.eup %1446 }
 0x31a   : > { %867 = vadd.xlane.f32.xlu1 %v866_v59  ;;  %858 = vadd.xlane.f32.xlu2 %v857_v26  ;;  %1452 = vpow2.f32 %v791_v14  ;;  %v860_v5 = vadd.f32 %v2121_v25, %v2119_v12 }
 0x31b   : > { %1454 = vpow2.f32 %v793_v3 }
 0x31e   : > { %v2123_v6 = vpop.eup %1448 }
 0x31f   : > { %v2125_v58 = vpop.eup %1450 }
 0x320   : > { %v851_v62 = vadd.f32 %v2125_v58, %v2123_v6  ;;  %v2131_v30 = vpop.eup %1452 }
 0x321   : > { %v2133_v8 = vpop.eup %1454 }
 0x322   : > { %861 = vadd.xlane.f32.xlu1 %v860_v5  ;;  %852 = vadd.xlane.f32.xlu2 %v851_v62  ;;  %v854_v31 = vadd.f32 %v2133_v8, %v2131_v30 }
 0x32a   : > { %855 = vadd.xlane.f32.xlu1 %v854_v31 }
 0x33a   : > { %365 = vperm.xlu2 %1389, %v358_v15  }
 0x342   : > { %375 = vperm.xlu2 %1389, %v360_v27  }
 0x343   : > { %370 = vperm.xlu1 %1388, %v359_v28  }
 0x34b   : > { %380 = vperm.xlu1 %1388, %v361_v34  }
 0x355   : > { %v877_v17 = vpop.xlane.xlu2 %876 }
 0x356   : > { %1456 = vrcp.f32 %v877_v17 }
 0x35c   : > { %v1457_v60 = vpop.eup %1456 }
 0x35d   : > { %v880_v1 = vpop.xlane.xlu1 %879  ;;  %v883_v0 = vpop.xlane.xlu2 %882  ;;  %v2154_v48 = vmul.f32 %v1457_v60, %v2011_v32  ;;  %v2157_v50 = vmul.f32 %v1457_v60, %v2014_v16 }
 0x35e   : > { %1458 = vrcp.f32 %v880_v1 }
 0x35f   : > { %1460 = vrcp.f32 %v883_v0  ;;  %1035 = vst [vmem:[%s2159_s29 + $0x80] sm:$0xff] %v2154_v48 }
 0x360   : > { %1036 = vst [vmem:[%s2159_s29 + $0x88] sm:$0xff] %v2157_v50 }
 0x364   : > { %v1459_v4 = vpop.eup %1458 }
 0x365   : > { %v1461_v32 = vpop.eup %1460  ;;  %v886_v36 = vpop.xlane.xlu1 %885  ;;  %v2166_v16 = vmul.f32 %v1459_v4, %v2025_v41  ;;  %v2175_v13 = vmul.f32 %v1459_v4, %v2027_v43 }
 0x366   : > { %1462 = vrcp.f32 %v886_v36  ;;  %v2169_v53 = vmul.f32 %v1461_v32, %v2021_v40  ;;  %v2172_v9 = vmul.f32 %v1461_v32, %v2023_v20 }
 0x367   : > { %1037 = vst [vmem:[%s2159_s29 + $0x90] sm:$0xff] %v2166_v16 }
 0x368   : > { %1039 = vst [vmem:[%s2159_s29 + $0xa0] sm:$0xff] %v2169_v53 }
 0x369   : > { %1040 = vst [vmem:[%s2159_s29 + $0xa8] sm:$0xff] %v2172_v9 }
 0x36a   : > { %1038 = vst [vmem:[%s2159_s29 + $0x98] sm:$0xff] %v2175_v13 }
 0x36c   : > { %v1463_v41 = vpop.eup %1462 }
 0x36d   : > { %v889_v23 = vpop.xlane.xlu2 %888  ;;  %v2186_v40 = vmul.f32 %v1463_v41, %v2033_v49  ;;  %v2189_v20 = vmul.f32 %v1463_v41, %v2037_v52 }
 0x36e   : > { %1464 = vrcp.f32 %v889_v23 }
 0x36f   : > { %1041 = vst [vmem:[%s2159_s29 + $0xb0] sm:$0xff] %v2186_v40 }
 0x370   : > { %1042 = vst [vmem:[%s2159_s29 + $0xb8] sm:$0xff] %v2189_v20 }
 0x374   : > { %v1465_v43 = vpop.eup %1464 }
 0x375   : > { %v892_v26 = vpop.xlane.xlu1 %891  ;;  %v895_v57 = vpop.xlane.xlu2 %894  ;;  %v939_v59 = vmul.f32 %v1465_v43, %v2045_v29  ;;  %v940_v14 = vmul.f32 %v1465_v43, %v2048_v11 }
 0x376   : > { %1466 = vrcp.f32 %v892_v26 }
 0x377   : > { %1468 = vrcp.f32 %v895_v57  ;;  %1043 = vst [vmem:[%s2159_s29 + $0xc0] sm:$0xff] %v939_v59 }
 0x378   : > { %1044 = vst [vmem:[%s2159_s29 + $0xc8] sm:$0xff] %v940_v14 }
 0x37c   : > { %v1467_v49 = vpop.eup %1466 }
 0x37d   : > { %v1469_v52 = vpop.eup %1468  ;;  %v871_v3 = vpop.xlane.xlu2 %870  ;;  %v941_v62 = vmul.f32 %v1467_v49, %v2059_v45  ;;  %v942_v29 = vmul.f32 %v1467_v49, %v2061_v38 }
 0x37e   : > { %v943_v5 = vmul.f32 %v1469_v52, %v2053_v35  ;;  %1470 = vrcp.f32 %v871_v3  ;;  %v944_v31 = vmul.f32 %v1469_v52, %v2057_v21  ;;  %v898_v11 = vpop.xlane.xlu1 %897 }
 0x37f   : > { %1045 = vst [vmem:[%s2159_s29 + $0xd0] sm:$0xff] %v941_v62  ;;  %1472 = vrcp.f32 %v898_v11  ;;  %v963_v36 = vpack.c.bf16 %v941_v62, %v939_v59  ;;  %v964_v41 = vpack.c.bf16 %v942_v29, %v940_v14  ;;  %v961_v59 = vpack.c.bf16 %v2186_v40, %v2169_v53 }
 0x380   : > { %1047 = vst [vmem:[%s2159_s29 + $0xe0] sm:$0xff] %v943_v5  ;;  %v962_v14 = vpack.c.bf16 %v2189_v20, %v2172_v9  ;;  %v959_v40 = vpack.c.bf16 %v2166_v16, %v2154_v48  ;;  %v960_v20 = vpack.c.bf16 %v2175_v13, %v2157_v50 }
 0x381   : > { %1048 = vst [vmem:[%s2159_s29 + $0xe8] sm:$0xff] %v944_v31 }
 0x382   : > { %1046 = vst [vmem:[%s2159_s29 + $0xd8] sm:$0xff] %v942_v29 }
 0x384   : > { %v1471_v15 = vpop.eup %1470 }
 0x385   : > { %v2208_v45 = vmul.f32 %v1471_v15, %v2071_v54  ;;  %v2211_v35 = vmul.f32 %v1471_v15, %v2075_v19  ;;  %v1473_v21 = vpop.eup %1472  ;;  %v865_v28 = vpop.xlane.xlu2 %864 }
 0x386   : > { %v945_v27 = vmul.f32 %v1473_v21, %v2079_v24  ;;  %v874_v38 = vpop.xlane.xlu1 %873  ;;  %v946_v34 = vmul.f32 %v1473_v21, %v2083_v33 }
 0x387   : > { %1031 = vst [vmem:[%s2159_s29 + $0x60] sm:$0xff] %v2208_v45  ;;  %1474 = vrcp.f32 %v874_v38 }
 0x388   : > { %1032 = vst [vmem:[%s2159_s29 + $0x68] sm:$0xff] %v2211_v35  ;;  %1476 = vrcp.f32 %v865_v28  ;;  %v965_v17 = vpack.c.bf16 %v945_v27, %v943_v5  ;;  %v966_v54 = vpack.c.bf16 %v946_v34, %v944_v31 }
 0x389   : > { %1049 = vst [vmem:[%s2159_s29 + $0xf0] sm:$0xff] %v945_v27 }
 0x38a   : > { %1050 = vst [vmem:[%s2159_s29 + $0xf8] sm:$0xff] %v946_v34  ;;  %967 = vmatpush.bf16.xpose.msra.mxu1 %v965_v17  ;;  %986 = vmatpush.bf16.xpose.msrb.mxu3 %v966_v54 }
 0x38d   : > { %v1475_v19 = vpop.eup %1474  ;;  %v859_v33 = vpop.xlane.xlu2 %858 }
 0x38e   : > { %v1477_v24 = vpop.eup %1476  ;;  %v868_v60 = vpop.xlane.xlu1 %867  ;;  %v929_v1 = vmul.f32 %v1475_v19, %v2089_v18  ;;  %v930_v0 = vmul.f32 %v1475_v19, %v2092_v7 }
 0x38f   : > { %1478 = vrcp.f32 %v868_v60  ;;  %v923_v4 = vmul.f32 %v1477_v24, %v2095_v10  ;;  %v924_v32 = vmul.f32 %v1477_v24, %v2097_v46 }
 0x390   : > { %1480 = vrcp.f32 %v859_v33  ;;  %1033 = vst [vmem:[%s2159_s29 + $0x70] sm:$0xff] %v929_v1  ;;  %v957_v52 = vpack.c.bf16 %v929_v1, %v2208_v45  ;;  %v958_v48 = vpack.c.bf16 %v930_v0, %v2211_v35 }
 0x391   : > { %1034 = vst [vmem:[%s2159_s29 + $0x78] sm:$0xff] %v930_v0 }
 0x392   : > { %968 = vmatpush.bf16.xpose.msra.mxu1 %v963_v36  ;;  %987 = vmatpush.bf16.xpose.msrb.mxu3 %v964_v41  ;;  %1027 = vst [vmem:[%s2159_s29 + $0x40] sm:$0xff] %v923_v4 }
 0x393   : > { %1028 = vst [vmem:[%s2159_s29 + $0x48] sm:$0xff] %v924_v32 }
 0x395   : > { %v1479_v23 = vpop.eup %1478  ;;  %v853_v43 = vpop.xlane.xlu2 %852 }
 0x396   : > { %v1481_v18 = vpop.eup %1480  ;;  %v862_v7 = vpop.xlane.xlu1 %861  ;;  %v925_v10 = vmul.f32 %v1479_v23, %v2103_v37  ;;  %v926_v46 = vmul.f32 %v1479_v23, %v2107_v51 }
 0x397   : > { %1482 = vrcp.f32 %v862_v7  ;;  %v919_v26 = vmul.f32 %v1481_v18, %v2109_v55  ;;  %v920_v57 = vmul.f32 %v1481_v18, %v2111_v22 }
 0x398   : > { %1484 = vrcp.f32 %v853_v43  ;;  %1029 = vst [vmem:[%s2159_s29 + $0x50] sm:$0xff] %v925_v10  ;;  %v955_v50 = vpack.c.bf16 %v925_v10, %v923_v4 }
 0x399   : > { %1030 = vst [vmem:[%s2159_s29 + $0x58] sm:$0xff] %v926_v46 }
 0x39a   : > { %969 = vmatpush.bf16.xpose.msra.mxu1 %v961_v59  ;;  %988 = vmatpush.bf16.xpose.msrb.mxu3 %v962_v14  ;;  %1023 = vst [vmem:[%s2159_s29 + $0x20] sm:$0xff] %v919_v26 }
 0x39b   : > { %1024 = vst [vmem:[%s2159_s29 + $0x28] sm:$0xff] %v920_v57 }
 0x39d   : > { %v1483_v37 = vpop.eup %1482 }
 0x39e   : > { %v1485_v51 = vpop.eup %1484  ;;  %v856_v55 = vpop.xlane.xlu1 %855  ;;  %v921_v22 = vmul.f32 %v1483_v37, %v2119_v12  ;;  %v922_v53 = vmul.f32 %v1483_v37, %v2121_v25 }
 0x39f   : > { %1486 = vrcp.f32 %v856_v55  ;;  %v915_v9 = vmul.f32 %v1485_v51, %v2123_v6  ;;  %v916_v49 = vmul.f32 %v1485_v51, %v2125_v58  ;;  %v956_v58 = vpack.c.bf16 %v926_v46, %v924_v32 }
 0x3a0   : > { %1025 = vst [vmem:[%s2159_s29 + $0x30] sm:$0xff] %v921_v22  ;;  %v953_v16 = vpack.c.bf16 %v921_v22, %v919_v26  ;;  %v954_v13 = vpack.c.bf16 %v922_v53, %v920_v57 }
 0x3a1   : > { %1026 = vst [vmem:[%s2159_s29 + $0x38] sm:$0xff] %v922_v53 }
 0x3a2   : > { %970 = vmatpush.bf16.xpose.msra.mxu1 %v959_v40  ;;  %989 = vmatpush.bf16.xpose.msrb.mxu3 %v960_v20  ;;  %1019 = vst [vmem:[%s2159_s29] sm:$0xff] %v915_v9 }
 0x3a3   : > { %1020 = vst [vmem:[%s2159_s29 + $0x8] sm:$0xff] %v916_v49 }
 0x3a5   : > { %v1487_v12 = vpop.eup %1486 }
 0x3a6   : > { %v917_v25 = vmul.f32 %v1487_v12, %v2131_v30  ;;  %v918_v6 = vmul.f32 %v1487_v12, %v2133_v8  ;;  %v366_v8 = vpop.permute.xlu2 %365 }
 0x3a7   : > { %v408_v29 = vadd.f32 %v1886_v39, %v366_v8  ;;  %v431_v11 = vadd.f32 %v1897_v56, %v366_v8 }
 0x3a8   : > { %1021 = vst [vmem:[%s2159_s29 + $0x10] sm:$0xff] %v917_v25  ;;  %v951_v30 = vpack.c.bf16 %v917_v25, %v915_v9  ;;  %v952_v62 = vpack.c.bf16 %v918_v6, %v916_v49 }
 0x3a9   : > { %1022 = vst [vmem:[%s2159_s29 + $0x18] sm:$0xff] %v918_v6 }
 0x3aa   : > { %971 = vmatpush.bf16.xpose.msra.mxu1 %v957_v52  ;;  %990 = vmatpush.bf16.xpose.msrb.mxu3 %v958_v48 }
 0x3ae   : > { %v376_v21 = vpop.permute.xlu2 %375 }
 0x3af   : > { %v436_v39 = vadd.f32 %v1903_v63, %v376_v21 }
 0x3b2   : > { %972 = vmatpush.bf16.xpose.msra.mxu1 %v955_v50  ;;  %991 = vmatpush.bf16.xpose.msrb.mxu3 %v956_v58 }
 0x3b5   : > { %v371_v3 = vpop.permute.xlu1 %370 }
 0x3b6   : > { %v410_v5 = vadd.f32 %v1888_v42, %v371_v3  ;;  %v433_v31 = vadd.f32 %v1900_v61, %v371_v3  ;;  %v413_v42 = vadd.f32 %v1891_v44, %v376_v21 }
 0x3b8   : > { %v947_v15 = vpack.c.bf16 %v410_v5, %v408_v29  ;;  %v948_v45 = vpack.c.bf16 %v433_v31, %v431_v11 }
 0x3ba   : > { %973 = vmatpush.bf16.xpose.msra.mxu1 %v953_v16  ;;  %992 = vmatpush.bf16.xpose.msrb.mxu3 %v954_v13 }
 0x3bd   : > { %v381_v35 = vpop.permute.xlu1 %380 }
 0x3be   : > { %v415_v27 = vadd.f32 %v1893_v47, %v381_v35  ;;  %v438_v38 = vadd.f32 %v1905_v2, %v381_v35 }
 0x3c0   : > { %v949_v61 = vpack.c.bf16 %v415_v27, %v413_v42  ;;  %v950_v28 = vpack.c.bf16 %v438_v38, %v436_v39 }
 0x3c2   : > { %974 = vmatpush.bf16.xpose.msra.mxu1 %v951_v30  ;;  %993 = vmatpush.bf16.xpose.msrb.mxu3 %v952_v62 }
 0x3c9   : > { %975 = vmatmul.bf16.vlgmr.msra.gmra.mxu1 %v947_v15  ;;  %994 = vmatmul.bf16.vlgmr.msrb.gmra.mxu3 %v948_v45 }
 0x3d9   : > { %980 = vmatmul.bf16.gmra.mxu1 %v949_v61  ;;  %999 = vmatmul.bf16.gmra.mxu3 %v950_v28 }
 0x3da   : > { %1549 = shalt.err (!%p1546_p0)
}
 0x3db   : > { %s1681_s20 = smov 256   ;;  %s1682_s16 = smov 16   ;;  %v1488_v17 = vld [vmem:[%s1842_s23] sm:$0xff]  ;;  %v1489_v33 = vld [vmem:[%s1842_s23 + $0x10] sm:$0xff] }
 0x3dc   : > { %1276 = dma.vmem_to_hbm [thread:$0]  (%p1810_p12), %s1091_s22, 4096, %s1093_s13, %s1057_s6, %s1681_s20, %s1681_s20, %s1682_s16  }
 0x3dd   : > { %s1005_s0 = sld [smem:[#allocation2]]  ;;  %s1226_s1 = sshll.u32 %s2150_s21, 5  ;;  %v1490_v41 = vld [vmem:[%s1842_s23 + $0x20] sm:$0xff]  ;;  %v1491_v46 = vld [vmem:[%s1842_s23 + $0x30] sm:$0xff] }
 0x3de   : > { %s319_s19 = scalar_lea.vmem [#allocation6], %s1226_s1  ;;  %s1262_s22 = sshll.u32 %s1664_s5, 3 }
 0x3df   : > { %s1067_s10 = sadd.s32 %s1660_s9, %s1262_s22  ;;  %s2373_s11 = sld [smem:[#allocation20_spill]] }
 0x3e0   : > { %s1263_s18 = sshll.u32 %s1067_s10, 3  ;;  %s1070_s29 = sshll.u32 %s319_s19, 4  ;;  %s1071_s29 = int_to_ptr.vmem [resolvable:$true] %s1070_s29 }
 0x3e1   : > { %s1052_s9 = scalar_lea.sflag [#allocation5], %s2150_s21 }
 0x3e3   : > { %v1006_v56 = vstv %s1005_s0 }
 0x3e5   : > { %s2374_s25 = smov %s2373_s11  ;;  %s1069_s17 = scalar_lea.hbm %s2373_s11, %s1263_s18 }
 0x3e6   : > { %s1072_s5 = sshll.u32 %s1069_s17, 4  ;;  %s1570_s22 = scalar_lea.hbm %s2374_s25, 128  ;;  %s1073_s5 = int_to_ptr.hbm [resolvable:$true] %s1072_s5 }
 0x3e7   : > { %s1564_s14 = sshra.s32 %s1073_s5, 4  ;;  %s1565_s14 = int_to_ptr.hbm [resolvable:$true] %s1564_s14 }
 0x3e8   : > { %s1566_s16 = scalar_lea.hbm %s1565_s14, 32  ;;  %p1571_p6 = scmp.lt.s32.totalorder %s1565_s14, %s2374_s25 }
 0x3e9   : > { %p1567_p1 = scmp.ne.s32.totalorder %s1565_s14, %s1566_s16  ;;  %p1572_p8 = scmp.lt.s32.totalorder %s1570_s22, %s1566_s16 }
 0x3eb   : > { %p1568_p4 = pnand %p1567_p1, %p1810_p12  ;;  %p1573_p3 = por %p1572_p8, %p1571_p6 }
 0x3ed   : > { %p1569_p5 = pneg %p1568_p4 }
 0x3ef   : > { %p1574_p7 = pnand %p1573_p3, %p1569_p5 }
 0x446   : > { %v976_v44 = vpop.f32.mrf.mxu1 }
 0x44c   : > { %v995_v47 = vpop.f32.mrf.mxu3 }
 0x44d   : > { %v996_v63 = vadd.f32 %v995_v47, %v976_v44 }
 0x44e   : > { %v978_v34 = vpop.f32.mrf.mxu1 }
 0x44f   : > { %v1007_v2 = vmul.f32 %v1006_v56, %v996_v63 }
 0x451   : > { %v1011_v54 = vadd.f32 %v1488_v17, %v1007_v2 }
 0x453   : > { %1015 = vst [vmem:[%s319_s19] sm:$0xff] %v1011_v54 }
 0x454   : > { %v997_v19 = vpop.f32.mrf.mxu3 }
 0x455   : > { %v998_v24 = vadd.f32 %v997_v19, %v978_v34 }
 0x456   : > { %v981_v0 = vpop.f32.mrf.mxu1 }
 0x457   : > { %v1008_v60 = vmul.f32 %v1006_v56, %v998_v24 }
 0x459   : > { %v1012_v1 = vadd.f32 %v1489_v33, %v1008_v60 }
 0x45b   : > { %1016 = vst [vmem:[%s319_s19 + $0x8] sm:$0xff] %v1012_v1 }
 0x45c   : > { %v1000_v4 = vpop.f32.mrf.mxu3 }
 0x45d   : > { %v1001_v32 = vadd.f32 %v1000_v4, %v981_v0 }
 0x45e   : > { %v983_v18 = vpop.f32.mrf.mxu1 }
 0x45f   : > { %v1009_v36 = vmul.f32 %v1006_v56, %v1001_v32 }
 0x461   : > { %v1013_v23 = vadd.f32 %v1490_v41, %v1009_v36 }
 0x463   : > { %1017 = vst [vmem:[%s319_s19 + $0x10] sm:$0xff] %v1013_v23 }
 0x464   : > { %v1002_v7 = vpop.f32.mrf.mxu3 }
 0x465   : > { %v1003_v43 = vadd.f32 %v1002_v7, %v983_v18 }
 0x467   : > { %v1010_v10 = vmul.f32 %v1006_v56, %v1003_v43 }
 0x469   : > { %v1014_v26 = vadd.f32 %v1491_v46, %v1010_v10 }
 0x46b   : > { %1018 = vst [vmem:[%s319_s19 + $0x18] sm:$0xff] %v1014_v26 }
 0x46c   : > { %1577 = shalt.err (!%p1574_p7)
}
 0x46d   : > { %s1683_s23 = smov 128   ;;  %s1684_s21 = smov 8  }
 0x46e   : > { %1275 = dma.vmem_to_hbm [thread:$0]  (%p1810_p12), %s1071_s29, 512, %s1073_s5, %s1052_s9, %s1683_s23, %s1681_s20, %s1684_s21  }
 0x46f PF: > { %p1291_p9 = scmp.ge.s32.totalorder %s1676_s12, 2  ;;  %s1107_s19 = sand.u32 1, %s1636_s26  }
 0x470   : > { %s1108_s13 = scalar_lea.sflag [#allocation5], %s1107_s19 }
 0x471   : > { %p1284_p10 = pnand %p1291_p9, %p1823_p2 }
 0x473   : > { %p1285_p11 = pneg %p1284_p10 }
 0x475   : > { %1627 = dma.done.wait (%p1285_p11), %s1108_s13, 512  }
 0x476   : > { %1629 = vsyncadd (%p1285_p11), %s1108_s13, 4294966784  ;;  %s1118_s6 = scalar_lea.sflag [#allocation8], %s1107_s19 }
 0x477   : > { %1631 = dma.done.wait (%p1285_p11), %s1118_s6, 4096  }
 0x478   : > { %1633 = vsyncadd (%p1285_p11), %s1118_s6, 4294963200  ;;  %s28_s12 = sadd.s32 1, %s1676_s12   ;;  %s2375_s24 = sld [smem:[#allocation17_spill]] }
 0x479   : > { %p25_p13 = scmp.ge.s32.totalorder %s28_s12, 6   ;;  %s2376_s20 = sld [smem:[#allocation16_spill]] }
 0x47a   : > { %s2377_s9 = sld [smem:[#allocation12_spill]]  ;;  %s2381_s26 = smov %s1640_s27 }
 0x47b   : > { %s2378_s5 = sld [smem:[#allocation13_spill]]  ;;  %s2382_s27 = smov %s1644_s28 }
 0x47c   : > { %s2379_s10 = sld [smem:[#allocation14_spill]]  ;;  %s2384_s29 = smov %s1652_s30 }
 0x47d   : > { %s2380_s11 = sld [smem:[#allocation15_spill]]  ;;  %s2385_s30 = smov %s1656_s8 }
 0x47e   : > { %s2383_s28 = smov %s2375_s24  ;;  %27 = sbr.rel (!%p25_p13) target bundleno = 16 (0x10), region = 107 }
 0x47f   : > { %s2386_s8 = smov %s2376_s20 }
 0x483   :  { %1124 = vsyncpa [#allocation4], 1 }
 0x484   :  { %1126 = vsyncpa [#allocation4 + $0x1], 1 }
 0x485   :  { %1127 = vsyncpa [#allocation5], 1 }
 0x486   :  { %1129 = vsyncpa [#allocation5 + $0x1], 1 }
 0x487   :  { %1130 = vsyncpa [#allocation8], 1 }
 0x488   :  { %1132 = vsyncpa [#allocation8 + $0x1], 1 }

</bundles_post_ra>
